<compile_context>
chip_gen: v7x
topology: tpu7x:2x2x1
jax: 0.10.0
libtpu: 0.0.40
codegen_flags: <defaults>
</compile_context>

<pallas_src>
import jax
import jax.numpy as jnp
from jax.experimental import pallas as pl
from jax.experimental.pallas import tpu as pltpu

H1 = 128
H2 = 64

LANE = 128        # batch is the lane axis in the transposed layout
TM_CAP = 8192     # rows per grid step; ~7.5 MiB VMEM/tile -> safe on v7x (32 MiB scoped)


def critic_kernel(xT_ref, w1t_ref, b1_ref, w2t_ref, b2_ref, w3_ref, b3_ref, o_ref):
    xT = xT_ref[...]                         # (F, TM)   lane-dense over batch
    feature_dim = xT.shape[0]
    w1t = w1t_ref[...]                       # (H1, F)

    # ---- Layer 1: h1^T = W1^T @ x^T + b1, ReLU ------------------------------
    if feature_dim <= 8:
        # F is tiny (2 for MountainCarContinuous): F outer-product FMAs on the
        # VPU, (H1,1)*(1,TM) broadcasts -- no degenerate K=F MXU matmul.
        acc = w1t[:, 0:1] * xT[0:1, :]
        for f in range(1, feature_dim):
            acc = acc + w1t[:, f:f + 1] * xT[f:f + 1, :]
    else:
        acc = jnp.dot(w1t, xT, preferred_element_type=jnp.float32)
    h1T = jnp.maximum(acc + b1_ref[...], 0.0)            # (H1, TM)

    # ---- Layer 2: h2^T = W2^T @ h1^T + b2, ReLU (MXU, N = TM full width) ----
    h2T = jnp.dot(w2t_ref[...], h1T, preferred_element_type=jnp.float32)
    h2T = jnp.maximum(h2T + b2_ref[...], 0.0)             # (H2, TM)

    # ---- Layer 3: out^T = w3^T @ h2^T + b3 as VPU multiply + sublane reduce -
    out_row = jnp.sum(h2T * w3_ref[...], axis=0, keepdims=True) + b3_ref[0]
    o_ref[...] = out_row.astype(o_ref.dtype)              # (1, TM) lane-dense


def _round_up(a, b):
    return ((a + b - 1) // b) * b


def critic_forward(x, params):
    """x: (batch, feature_dim) float32; params: dict of weights/biases."""
    w1t, b1, w2t, b2, w3, b3 = (
        params["w1t"], params["b1"], params["w2t"],
        params["b2"], params["w3"], params["b3"],
    )
    batch, feature_dim = x.shape

    # Pick grid-step count first: 1 step for small batches, 2 once the batch is
    # large enough that splitting across v7x's two TensorCores pays for the
    # extra step.  Then round the tile up to a lane multiple (waste <= 127 rows).
    target_tiles = 1 if batch < 1024 else 2
    num_tiles = max(target_tiles, pl.cdiv(batch, TM_CAP))
    tm = _round_up(pl.cdiv(batch, num_tiles), LANE)
    batch_pad = num_tiles * tm

    # Transposed input: (F, batch_pad), batch on the lane axis.
    xT = x.T
    if batch_pad != batch:
        xT = jnp.pad(xT, ((0, 0), (0, batch_pad - batch)))

    out = pl.pallas_call(
        critic_kernel,
        out_shape=jax.ShapeDtypeStruct((1, batch_pad), jnp.float32),
        grid=(num_tiles,),
        in_specs=[
            pl.BlockSpec((feature_dim, tm), lambda i: (0, i)),      # x^T (tiled over batch)
            pl.BlockSpec((H1, feature_dim), lambda i: (0, 0)),      # W1^T (resident)
            pl.BlockSpec((H1, 1), lambda i: (0, 0)),                # b1 column
            pl.BlockSpec((H2, H1), lambda i: (0, 0)),               # W2^T
            pl.BlockSpec((H2, 1), lambda i: (0, 0)),                # b2 column
            pl.BlockSpec((H2, 1), lambda i: (0, 0)),                # w3 column
            pl.BlockSpec(memory_space=pltpu.MemorySpace.SMEM),      # b3 scalar (1,)
        ],
        out_specs=pl.BlockSpec((1, tm), lambda i: (0, i)),          # lane-dense output
        compiler_params=pltpu.CompilerParams(
            dimension_semantics=("parallel",),
        ),
    )(xT, w1t, b1, w2t, b2, w3, b3)

    return out[0, :batch].reshape(batch, 1)


def init_params(key, feature_dim):
    """Deterministic init mimicking PyTorch's default Linear init
    (uniform(-1/sqrt(fan_in), 1/sqrt(fan_in))), stored in transposed layout."""
    def linear(key, fan_in, fan_out):
        kw, kb = jax.random.split(key)
        bound = 1.0 / jnp.sqrt(jnp.asarray(fan_in, jnp.float32))
        w = jax.random.uniform(kw, (fan_in, fan_out), jnp.float32, -bound, bound)
        b = jax.random.uniform(kb, (fan_out,), jnp.float32, -bound, bound)
        return w, b

    k1, k2, k3 = jax.random.split(key, 3)
    w1, b1 = linear(k1, feature_dim, H1)
    w2, b2 = linear(k2, H1, H2)
    w3, b3 = linear(k3, H2, 1)
    return {
        "w1t": w1.T,                  # (H1, F)
        "b1": b1.reshape(H1, 1),      # column, broadcasts against (H1, TM)
        "w2t": w2.T,                  # (H2, H1)
        "b2": b2.reshape(H2, 1),      # column
        "w3": w3,                     # (H2, 1) column for the sublane reduce
        "b3": b3,                     # (1,) scalar, lives in SMEM
    }


def reference_forward(x, params):
    h1 = jnp.maximum(x @ params["w1t"].T + params["b1"].T, 0.0)
    h2 = jnp.maximum(h1 @ params["w2t"].T + params["b2"].T, 0.0)
    return h2 @ params["w3"] + params["b3"]


if __name__ == "__main__":
    key = jax.random.PRNGKey(0)
    k_x, k_p = jax.random.split(key)

    batch = 8
    feature_dim = 2  # MountainCarContinuous-v0 observation dim

    x = jax.random.normal(k_x, (batch, feature_dim), jnp.float32)
    params = init_params(k_p, feature_dim)

    out = jax.jit(critic_forward)(x, params)
    out = jax.block_until_ready(out)

    ref = reference_forward(x, params)
    assert out.shape == (batch, 1)
    assert jnp.allclose(out, ref, atol=1e-5, rtol=1e-5)

    print("KERNEL_OK")
</pallas_src>

<mosaic_0001>
module attributes {stable_mosaic.version = 11 : i64} {
  func.func @critic_kernel(%arg0: i32, %arg1: memref<2x128xf32, #tpu.memory_space<vmem>>, %arg2: memref<128x2xf32, #tpu.memory_space<vmem>>, %arg3: memref<128x1xf32, #tpu.memory_space<vmem>>, %arg4: memref<64x128xf32, #tpu.memory_space<vmem>>, %arg5: memref<64x1xf32, #tpu.memory_space<vmem>>, %arg6: memref<64x1xf32, #tpu.memory_space<vmem>>, %arg7: memref<1xf32, #tpu.memory_space<smem>>, %arg8: memref<1x128xf32, #tpu.memory_space<vmem>>) attributes {dimension_semantics = [#tpu.dimension_semantics<parallel>], iteration_bounds = array<i64: 1>, scalar_prefetch = 0 : i64, scratch_operands = 0 : i64, tpu.core_type = #tpu.core_type<tc>, window_params = [{transform_indices = @transform_0, window_bounds = array<i64: 2, 128>}, {pipeline_mode = #tpu.pipeline_mode<synchronous>, transform_indices = @transform_1, window_bounds = array<i64: 128, 2>}, {pipeline_mode = #tpu.pipeline_mode<synchronous>, transform_indices = @transform_2, window_bounds = array<i64: 128, 1>}, {pipeline_mode = #tpu.pipeline_mode<synchronous>, transform_indices = @transform_3, window_bounds = array<i64: 64, 128>}, {pipeline_mode = #tpu.pipeline_mode<synchronous>, transform_indices = @transform_4, window_bounds = array<i64: 64, 1>}, {pipeline_mode = #tpu.pipeline_mode<synchronous>, transform_indices = @transform_5, window_bounds = array<i64: 64, 1>}, {transform_indices = @transform_6, window_bounds = array<i64: 1>}, {transform_indices = @transform_7, window_bounds = array<i64: 1, 128>}]} {
    %c0 = arith.constant 0 : index
    %c0_0 = arith.constant 0 : index
    %0 = vector.load %arg1[%c0, %c0_0] : memref<2x128xf32, #tpu.memory_space<vmem>>, vector<2x128xf32>
    %c0_1 = arith.constant 0 : index
    %c0_2 = arith.constant 0 : index
    %1 = vector.load %arg2[%c0_1, %c0_2] : memref<128x2xf32, #tpu.memory_space<vmem>>, vector<128x2xf32>
    %2 = vector.extract_strided_slice %1 {offsets = [0, 0], sizes = [128, 1], strides = [1, 1]} : vector<128x2xf32> to vector<128x1xf32>
    %3 = vector.extract_strided_slice %0 {offsets = [0, 0], sizes = [1, 128], strides = [1, 1]} : vector<2x128xf32> to vector<1x128xf32>
    %4 = vector.broadcast %2 : vector<128x1xf32> to vector<128x128xf32>
    %5 = vector.broadcast %3 : vector<1x128xf32> to vector<128x128xf32>
    %6 = arith.mulf %4, %5 : vector<128x128xf32>
    %7 = vector.extract_strided_slice %1 {offsets = [0, 1], sizes = [128, 1], strides = [1, 1]} : vector<128x2xf32> to vector<128x1xf32>
    %8 = vector.extract_strided_slice %0 {offsets = [1, 0], sizes = [1, 128], strides = [1, 1]} : vector<2x128xf32> to vector<1x128xf32>
    %9 = vector.broadcast %7 : vector<128x1xf32> to vector<128x128xf32>
    %10 = vector.broadcast %8 : vector<1x128xf32> to vector<128x128xf32>
    %11 = arith.mulf %9, %10 : vector<128x128xf32>
    %12 = arith.addf %6, %11 : vector<128x128xf32>
    %c0_3 = arith.constant 0 : index
    %c0_4 = arith.constant 0 : index
    %13 = vector.load %arg3[%c0_3, %c0_4] : memref<128x1xf32, #tpu.memory_space<vmem>>, vector<128x1xf32>
    %14 = vector.broadcast %13 : vector<128x1xf32> to vector<128x128xf32>
    %15 = arith.addf %12, %14 : vector<128x128xf32>
    %cst = arith.constant 0.000000e+00 : f32
    %16 = vector.broadcast %cst : f32 to vector<128x128xf32>
    %17 = arith.maximumf %15, %16 : vector<128x128xf32>
    %c0_5 = arith.constant 0 : index
    %c0_6 = arith.constant 0 : index
    %18 = vector.load %arg4[%c0_5, %c0_6] : memref<64x128xf32, #tpu.memory_space<vmem>>, vector<64x128xf32>
    %cst_7 = arith.constant dense<0.000000e+00> : vector<64x128xf32>
    %19 = tpu.matmul %18, %17, %cst_7 {dimension_numbers = #tpu.dot_dimension_numbers<[1], [0], [0], [1], [0, 0, 1, 1], [], []>} : vector<64x128xf32>, vector<128x128xf32>, vector<64x128xf32> -> vector<64x128xf32>
    %c0_8 = arith.constant 0 : index
    %c0_9 = arith.constant 0 : index
    %20 = vector.load %arg5[%c0_8, %c0_9] : memref<64x1xf32, #tpu.memory_space<vmem>>, vector<64x1xf32>
    %21 = vector.broadcast %20 : vector<64x1xf32> to vector<64x128xf32>
    %22 = arith.addf %19, %21 : vector<64x128xf32>
    %cst_10 = arith.constant 0.000000e+00 : f32
    %23 = vector.broadcast %cst_10 : f32 to vector<64x128xf32>
    %24 = arith.maximumf %22, %23 : vector<64x128xf32>
    %c0_11 = arith.constant 0 : index
    %c0_12 = arith.constant 0 : index
    %25 = vector.load %arg6[%c0_11, %c0_12] : memref<64x1xf32, #tpu.memory_space<vmem>>, vector<64x1xf32>
    %26 = vector.broadcast %25 : vector<64x1xf32> to vector<64x128xf32>
    %27 = arith.mulf %24, %26 : vector<64x128xf32>
    %cst_13 = arith.constant dense<0.000000e+00> : vector<128xf32>
    %28 = vector.multi_reduction <add>, %27, %cst_13 [0] : vector<64x128xf32> to vector<128xf32>
    %29 = vector.shape_cast %28 : vector<128xf32> to vector<1x128xf32>
    %c0_14 = arith.constant 0 : index
    %30 = memref.load %arg7[%c0_14] : memref<1xf32, #tpu.memory_space<smem>>
    %31 = vector.broadcast %30 : f32 to vector<1x128xf32>
    %32 = arith.addf %29, %31 : vector<1x128xf32>
    %c0_15 = arith.constant 0 : index
    %c0_16 = arith.constant 0 : index
    %33 = vector.load %arg8[%c0_15, %c0_16] : memref<1x128xf32, #tpu.memory_space<vmem>>, vector<1x128xf32>
    tpu.vector_store %arg8[%c0_15, %c0_16], %32 {strides = array<i32>} : memref<1x128xf32, #tpu.memory_space<vmem>>, vector<1x128xf32>,
    return
  }
  func.func @transform_0(%arg0: i32) -> (i32, i32) {
    %c0_i32 = arith.constant 0 : i32
    %c0_i32_0 = arith.constant 0 : i32
    return %c0_i32, %arg0 : i32, i32
  }
  func.func @transform_1(%arg0: i32) -> (i32, i32) {
    %c0_i32 = arith.constant 0 : i32
    %c0_i32_0 = arith.constant 0 : i32
    %c0_i32_1 = arith.constant 0 : i32
    return %c0_i32, %c0_i32_0 : i32, i32
  }
  func.func @transform_2(%arg0: i32) -> (i32, i32) {
    %c0_i32 = arith.constant 0 : i32
    %c0_i32_0 = arith.constant 0 : i32
    %c0_i32_1 = arith.constant 0 : i32
    return %c0_i32, %c0_i32_0 : i32, i32
  }
  func.func @transform_3(%arg0: i32) -> (i32, i32) {
    %c0_i32 = arith.constant 0 : i32
    %c0_i32_0 = arith.constant 0 : i32
    %c0_i32_1 = arith.constant 0 : i32
    return %c0_i32, %c0_i32_0 : i32, i32
  }
  func.func @transform_4(%arg0: i32) -> (i32, i32) {
    %c0_i32 = arith.constant 0 : i32
    %c0_i32_0 = arith.constant 0 : i32
    %c0_i32_1 = arith.constant 0 : i32
    return %c0_i32, %c0_i32_0 : i32, i32
  }
  func.func @transform_5(%arg0: i32) -> (i32, i32) {
    %c0_i32 = arith.constant 0 : i32
    %c0_i32_0 = arith.constant 0 : i32
    %c0_i32_1 = arith.constant 0 : i32
    return %c0_i32, %c0_i32_0 : i32, i32
  }
  func.func @transform_6(%arg0: i32) -> i32 {
    %c0_i32 = arith.constant 0 : i32
    %c0_i32_0 = arith.constant 0 : i32
    return %c0_i32 : i32
  }
  func.func @transform_7(%arg0: i32) -> (i32, i32) {
    %c0_i32 = arith.constant 0 : i32
    %c0_i32_0 = arith.constant 0 : i32
    return %c0_i32, %arg0 : i32, i32
  }
}

</mosaic_0001>

<bundles_post_ra>
// kernel: critic_forward.1
= control target key start
LH: loop header
LB: loop body
LE: loop exit
PB: predicated region body
PF: predicated region fallthrough
CT: control target
= control target key end

     0   :  { %v754_v0 = vmov 1   ;;  %v755_v7 = vmov 0   ;;  %v124_v56 = vlaneseq  ;;  %s1053_s1 = inlined_call_operand.vmem [shape: f32[128,2], index: 1, kind: input, shape index: {}]   ;;  %s1054_s2 = inlined_call_operand.vmem [shape: f32[128,1], index: 2, kind: input, shape index: {}]   ;;  %s1055_s4 = inlined_call_operand.vmem [shape: f32[64,1], index: 4, kind: input, shape index: {}]   ;;  %s1056_s5 = inlined_call_operand.vmem [shape: f32[64,1], index: 5, kind: input, shape index: {}]   ;;  %s1057_s3 = inlined_call_operand.vmem [shape: f32[64,128], index: 3, kind: input, shape index: {}]   ;;  %s1058_s0 = inlined_call_operand.vmem [shape: f32[2,128], index: 0, kind: input, shape index: {}]   ;;  %s1059_s6 = inlined_call_operand.<no memory space> [shape: f32[1], index: 6, kind: input, shape index: {}]   ;;  %s1060_s7 = inlined_call_operand.vmem [shape: f32[1,128], index: 7, kind: output, shape index: {}]  }
   0x1   :  { %738 = vset.pattern.permute.xlu0 %v754_v0  ;;  %736 = vset.pattern.permute.xlu1 %v754_v0  ;;  %v30_v1 = vld [vmem:[%s1053_s1 + $0x10] sm:$0xff]  ;;  %v28_v2 = vld [vmem:[%s1053_s1] sm:$0xff]  ;;  %v29_v4 = vld [vmem:[%s1053_s1 + $0x8] sm:$0xff] }
   0x2   :  { %153 = vperm.xlu0 %738, %v30_v1   ;;  %145 = vperm.xlu1 %736, %v28_v2   ;;  %v32_v3 = vld [vmem:[%s1053_s1 + $0x20] sm:$0xff]  ;;  %v34_v5 = vld [vmem:[%s1053_s1 + $0x30] sm:$0xff]  ;;  %v31_v6 = vld [vmem:[%s1053_s1 + $0x18] sm:$0xff]  ;;  %v125_v60 = vshrl.u32 %v124_v56, 7 }
   0x3   :  { %v36_v8 = vld [vmem:[%s1053_s1 + $0x40] sm:$0xff]  ;;  %v38_v9 = vld [vmem:[%s1053_s1 + $0x50] sm:$0xff]  ;;  %v33_v13 = vld [vmem:[%s1053_s1 + $0x28] sm:$0xff] }
   0x4   :  { %v244_v10 = vld [vmem:[%s1054_s2] sm:$0xff]  ;;  %v837_v12 = vld [vmem:[%s1053_s1 + $0x70] sm:$0xff]  ;;  %v245_v15 = vld [vmem:[%s1054_s2 + $0x8] sm:$0xff] }
   0x5   :  { %v830_v11 = vld [vmem:[%s1053_s1 + $0x60] sm:$0xff]  ;;  %v246_v14 = vld [vmem:[%s1054_s2 + $0x10] sm:$0xff]  ;;  %v247_v16 = vld [vmem:[%s1054_s2 + $0x18] sm:$0xff] }
   0x6   :  { %161 = vperm.xlu0 %738, %v32_v3   ;;  %149 = vperm.xlu1 %736, %v29_v4   ;;  %v35_v17 = vld [vmem:[%s1053_s1 + $0x38] sm:$0xff]  ;;  %v249_v18 = vld [vmem:[%s1054_s2 + $0x28] sm:$0xff]  ;;  %v248_v20 = vld [vmem:[%s1054_s2 + $0x20] sm:$0xff] }
   0x7   :  { %v251_v19 = vld [vmem:[%s1054_s2 + $0x38] sm:$0xff]  ;;  %v253_v21 = vld [vmem:[%s1054_s2 + $0x48] sm:$0xff]  ;;  %v380_v25 = vld [vmem:[%s1055_s4] sm:$0xff] }
   0x8   :  { %v255_v22 = vld [vmem:[%s1054_s2 + $0x58] sm:$0xff]  ;;  %v37_v23 = vld [vmem:[%s1053_s1 + $0x48] sm:$0xff]  ;;  %v382_v26 = vld [vmem:[%s1055_s4 + $0x10] sm:$0xff] }
   0x9   :  { %v257_v24 = vld [vmem:[%s1054_s2 + $0x68] sm:$0xff]  ;;  %v250_v27 = vld [vmem:[%s1054_s2 + $0x30] sm:$0xff]  ;;  %v541_v28 = vld [vmem:[%s1056_s5] sm:$0xff] }
   0xa   :  { %169 = vperm.xlu0 %738, %v34_v5   ;;  %737 = vset.pattern.permute.xlu1 %v755_v7  ;;  %v384_v29 = vld [vmem:[%s1055_s4 + $0x20] sm:$0xff]  ;;  %v39_v30 = vld [vmem:[%s1053_s1 + $0x58] sm:$0xff]  ;;  %v385_v31 = vld [vmem:[%s1055_s4 + $0x28] sm:$0xff] }
   0xb   :  { %61 = vperm.xlu1 %737, %v31_v6   ;;  %v386_v32 = vld [vmem:[%s1055_s4 + $0x30] sm:$0xff]  ;;  %v252_v33 = vld [vmem:[%s1054_s2 + $0x40] sm:$0xff]  ;;  %v387_v34 = vld [vmem:[%s1055_s4 + $0x38] sm:$0xff] }
   0xc   :  { %v547_v35 = vld [vmem:[%s1056_s5 + $0x30] sm:$0xff]  ;;  %v41_v36 = vld [vmem:[%s1053_s1 + $0x68] sm:$0xff]  ;;  %v43_v38 = vld [vmem:[%s1053_s1 + $0x78] sm:$0xff] }
   0xd   :  { %v254_v37 = vld [vmem:[%s1054_s2 + $0x50] sm:$0xff]  ;;  %v256_v39 = vld [vmem:[%s1054_s2 + $0x60] sm:$0xff]  ;;  %v259_v45 = vld [vmem:[%s1054_s2 + $0x78] sm:$0xff] }
   0xe   :  { %177 = vperm.xlu0 %738, %v36_v8   ;;  %v258_v42 = vld [vmem:[%s1054_s2 + $0x70] sm:$0xff]  ;;  %v381_v48 = vld [vmem:[%s1055_s4 + $0x8] sm:$0xff]  ;;  %v383_v50 = vld [vmem:[%s1055_s4 + $0x18] sm:$0xff] }
   0xf   :  { %739 = vset.pattern.permute.xlu1 %v754_v0  ;;  %v372_v53 = vld [vmem:[%s1057_s3] sm:$0xff]  ;;  %v542_v55 = vld [vmem:[%s1056_s5 + $0x8] sm:$0xff]  ;;  %v543_v59 = vld [vmem:[%s1056_s5 + $0x10] sm:$0xff] }
  0x10   :  { %157 = vperm.xlu1 %739, %v31_v6   ;;  %v376_v54 = vld [vmem:[%s1057_s3 + $0x20] sm:$0xff]  ;;  %674 = vmatprep.mubr.f32.mxu0 %v372_v53  ;;  %v544_v63 = vld [vmem:[%s1056_s5 + $0x18] sm:$0xff] }
  0x11   :  { %680 = vmatprep.mubr.f32.mxu1 %v376_v54 }
  0x12   :  { %185 = vperm.xlu0 %738, %v38_v9  }
  0x14   :  { %740 = vset.pattern.permute.xlu1 %v755_v7 }
  0x15   :  { %262 = vperm.xlu1 %740, %v244_v10  }
  0x16   :  { %193 = vperm.xlu0 %738, %v830_v11  }
  0x19   :  { %66 = vperm.xlu1 %740, %v32_v3  }
  0x1a   :  { %201 = vperm.xlu0 %738, %v837_v12  }
  0x1d   :  { %71 = vperm.xlu1 %740, %v33_v13  }
  0x1e   :  { %751 = vset.pattern.permute.xlu0 %v755_v7 }
  0x1f   :  { %46 = vperm.xlu0 %751, %v28_v2   ;;  %v27_v2 = vld [vmem:[%s1058_s0] sm:$0x3] }
  0x21   :  { %741 = vset.pattern.permute.xlu1 %v754_v0 }
  0x22   :  { %165 = vperm.xlu1 %741, %v33_v13  }
  0x23   :  { %51 = vperm.xlu0 %751, %v29_v4  }
  0x26   :  { %742 = vset.pattern.permute.xlu1 %v755_v7 }
  0x27   :  { %56 = vperm.xlu0 %751, %v30_v1   ;;  %272 = vperm.xlu1 %742, %v246_v14   ;;  %v126_v1 = vsub.s32 0, %v125_v60 }
  0x2b   :  { %267 = vperm.xlu0 %751, %v245_v15   ;;  %76 = vperm.xlu1 %742, %v34_v5   ;;  %v545_v5 = vld [vmem:[%s1056_s5 + $0x20] sm:$0xff] }
  0x2f   :  { %277 = vperm.xlu0 %751, %v247_v16   ;;  %81 = vperm.xlu1 %742, %v35_v17  }
  0x33   :  { %287 = vperm.xlu0 %751, %v249_v18   ;;  %743 = vset.pattern.permute.xlu1 %v754_v0  ;;  %v548_v18 = vld [vmem:[%s1056_s5 + $0x38] sm:$0xff] }
  0x34   :  { %173 = vperm.xlu1 %743, %v35_v17  }
  0x37   :  { %297 = vperm.xlu0 %751, %v251_v19  }
  0x38   :  { %744 = vset.pattern.permute.xlu1 %v755_v7 }
  0x39   :  { %282 = vperm.xlu1 %744, %v248_v20  }
  0x3b   :  { %307 = vperm.xlu0 %751, %v253_v21  }
  0x3d   :  { %86 = vperm.xlu1 %744, %v36_v8  }
  0x3f   :  { %317 = vperm.xlu0 %751, %v255_v22  }
  0x41   :  { %91 = vperm.xlu1 %744, %v37_v23  }
  0x43   :  { %327 = vperm.xlu0 %751, %v257_v24  }
  0x45   :  { %745 = vset.pattern.permute.xlu1 %v754_v0 }
  0x46   :  { %181 = vperm.xlu1 %745, %v37_v23  }
  0x47   :  { %390 = vperm.xlu0 %751, %v380_v25  }
  0x4a   :  { %746 = vset.pattern.permute.xlu1 %v755_v7 }
  0x4b   :  { %400 = vperm.xlu0 %751, %v382_v26   ;;  %292 = vperm.xlu1 %746, %v250_v27  }
  0x4f   :  { %551 = vperm.xlu0 %751, %v541_v28   ;;  %96 = vperm.xlu1 %746, %v38_v9  }
  0x53   :  { %410 = vperm.xlu0 %751, %v384_v29   ;;  %101 = vperm.xlu1 %746, %v39_v30  }
  0x57   :  { %415 = vperm.xlu0 %751, %v385_v31   ;;  %747 = vset.pattern.permute.xlu1 %v754_v0 }
  0x58   :  { %189 = vperm.xlu1 %747, %v39_v30  }
  0x5b   :  { %420 = vperm.xlu0 %751, %v386_v32  }
  0x5c   :  { %748 = vset.pattern.permute.xlu1 %v755_v7 }
  0x5d   :  { %302 = vperm.xlu1 %748, %v252_v33  }
  0x5f   :  { %425 = vperm.xlu0 %751, %v387_v34  }
  0x61   :  { %106 = vperm.xlu1 %748, %v830_v11   ;;  %v546_v11 = vld [vmem:[%s1056_s5 + $0x28] sm:$0xff] }
  0x63   :  { %581 = vperm.xlu0 %751, %v547_v35  }
  0x65   :  { %111 = vperm.xlu1 %748, %v41_v36  }
  0x69   :  { %749 = vset.pattern.permute.xlu1 %v754_v0 }
  0x6a   :  { %197 = vperm.xlu1 %749, %v41_v36  }
  0x6e   :  { %750 = vset.pattern.permute.xlu1 %v755_v7 }
  0x6f   :  { %312 = vperm.xlu1 %750, %v254_v37  }
  0x73   :  { %116 = vperm.xlu1 %750, %v837_v12  }
  0x77   :  { %121 = vperm.xlu1 %750, %v43_v38  }
  0x7b   :  { %752 = vset.pattern.permute.xlu1 %v754_v0  ;;  %v210_v0 = vsub.s32 1, %v125_v60 }
  0x7c   :  { %205 = vperm.xlu1 %752, %v43_v38  }
  0x7d   :  { %v981_v6 = vrot.slane %v27_v2, %v210_v0 }
  0x80   :  { %753 = vset.pattern.permute.xlu1 %v755_v7  ;;  %v983_v7 = vrot.slane %v27_v2, %v126_v1 }
  0x81   :  { %322 = vperm.xlu1 %753, %v256_v39   ;;  %v146_v40 = vpop.permute.xlu1 %145  ;;  %v154_v41 = vpop.permute.xlu0 %153 }
  0x82   :  { %v212_v12 = vmul.f32 %v981_v6, %v146_v40  ;;  %v214_v13 = vmul.f32 %v981_v6, %v154_v41 }
  0x85   :  { %332 = vperm.xlu1 %753, %v258_v42   ;;  %v150_v43 = vpop.permute.xlu1 %149  ;;  %v939_v44 = vpop.permute.xlu0 %161 }
  0x86   :  { %v213_v19 = vmul.f32 %v981_v6, %v150_v43  ;;  %v216_v40 = vmul.f32 %v981_v6, %v939_v44 }
  0x89   :  { %337 = vperm.xlu1 %753, %v259_v45   ;;  %v944_v46 = vpop.permute.xlu0 %169 }
  0x8a   :  { %v62_v47 = vpop.permute.xlu1 %61 }
  0x8b   :  { %v131_v27 = vmul.f32 %v983_v7, %v62_v47 }
  0x8d   :  { %395 = vperm.xlu1 %753, %v381_v48   ;;  %v949_v49 = vpop.permute.xlu0 %177 }
  0x8f   :  { %v158_v51 = vpop.permute.xlu1 %157 }
  0x90   :  { %v215_v21 = vmul.f32 %v981_v6, %v158_v51 }
  0x91   :  { %405 = vperm.xlu1 %753, %v383_v50   ;;  %v954_v52 = vpop.permute.xlu0 %185 }
  0x92   :  { %v231_v32 = vadd.f32 %v215_v21, %v131_v27 }
  0x94   :  { %v263_v57 = vpop.permute.xlu1 %262 }
  0x95   :  { %556 = vperm.xlu1 %753, %v542_v55   ;;  %v965_v58 = vpop.permute.xlu0 %193 }
  0x98   :  { %v67_v61 = vpop.permute.xlu1 %66 }
  0x99   :  { %561 = vperm.xlu1 %753, %v543_v59   ;;  %v970_v62 = vpop.permute.xlu0 %201  ;;  %v132_v41 = vmul.f32 %v983_v7, %v67_v61 }
  0x9b   :  { %v232_v51 = vadd.f32 %v216_v40, %v132_v41 }
  0x9c   :  { %v72_v3 = vpop.permute.xlu1 %71 }
  0x9d   :  { %566 = vperm.xlu1 %753, %v544_v63   ;;  %v133_v42 = vmul.f32 %v983_v7, %v72_v3  ;;  %v218_v63 = vmul.f32 %v981_v6, %v944_v46 }
  0x9e   :  { %v47_v4 = vpop.permute.xlu0 %46 }
  0x9f   :  { %v128_v8 = vmul.f32 %v983_v7, %v47_v4 }
  0xa1   :  { %571 = vperm.xlu1 %753, %v545_v5   ;;  %v166_v9 = vpop.permute.xlu1 %165  ;;  %v228_v14 = vadd.f32 %v212_v12, %v128_v8 }
  0xa2   :  { %v52_v10 = vpop.permute.xlu0 %51  ;;  %v217_v37 = vmul.f32 %v981_v6, %v166_v9 }
  0xa3   :  { %v129_v15 = vmul.f32 %v983_v7, %v52_v10  ;;  %v340_v22 = vadd.f32 %v263_v57, %v228_v14 }
  0xa4   :  { %v233_v48 = vadd.f32 %v217_v37, %v133_v42 }
  0xa5   :  { %576 = vperm.xlu1 %753, %v546_v11   ;;  %v229_v24 = vadd.f32 %v213_v19, %v129_v15  ;;  %v356_v30 = vmax.f32 %v340_v22, 0.0 }
  0xa6   :  { %v57_v16 = vpop.permute.xlu0 %56  ;;  %v273_v17 = vpop.permute.xlu1 %272 }
  0xa7   :  { %v130_v20 = vmul.f32 %v983_v7, %v57_v16  ;;  %v220_v16 = vmul.f32 %v981_v6, %v949_v49 }
  0xa9   :  { %v230_v23 = vadd.f32 %v214_v13, %v130_v20  ;;  %586 = vperm.xlu1 %753, %v548_v18  }
  0xaa   :  { %v268_v25 = vpop.permute.xlu0 %267  ;;  %v77_v26 = vpop.permute.xlu1 %76 }
  0xab   :  { %v341_v28 = vadd.f32 %v268_v25, %v229_v24  ;;  %v342_v29 = vadd.f32 %v273_v17, %v230_v23  ;;  %v134_v0 = vmul.f32 %v983_v7, %v77_v26 }
  0xad   :  { %v357_v31 = vmax.f32 %v341_v28, 0.0  ;;  %v358_v38 = vmax.f32 %v342_v29, 0.0  ;;  %v234_v5 = vadd.f32 %v218_v63, %v134_v0 }
  0xae   :  { %v278_v33 = vpop.permute.xlu0 %277  ;;  %v82_v34 = vpop.permute.xlu1 %81 }
  0xaf   :  { %v686_v35 = vpack.c.bf16 %v357_v31, %v356_v30  ;;  %v343_v36 = vadd.f32 %v278_v33, %v231_v32  ;;  %v135_v61 = vmul.f32 %v983_v7, %v82_v34  ;;  %v222_v34 = vmul.f32 %v981_v6, %v954_v52 }
  0xb1   :  { %v359_v39 = vmax.f32 %v343_v36, 0.0  ;;  %687 = vmatprep.subr.bf16.mxu0 %v686_v35  ;;  %718 = vmatprep.subr.bf16.mxu1 %v686_v35 }
  0xb2   :  { %689 = vmatpush3.bf16.msra.mxu0 %v686_v35  ;;  %726 = vmatpush3.bf16.msra.mxu1 %v686_v35  ;;  %v288_v47 = vpop.permute.xlu0 %287 }
  0xb3   :  { %v690_v43 = vpack.c.bf16 %v359_v39, %v358_v38  ;;  %v174_v45 = vpop.permute.xlu1 %173  ;;  %v345_v50 = vadd.f32 %v288_v47, %v233_v48 }
  0xb4   :  { %v219_v60 = vmul.f32 %v981_v6, %v174_v45 }
  0xb5   :  { %691 = vmatprep.subr.bf16.mxu0 %v690_v43  ;;  %719 = vmatprep.subr.bf16.mxu1 %v690_v43  ;;  %v361_v55 = vmax.f32 %v345_v50, 0.0 }
  0xb6   :  { %693 = vmatpush3.bf16.msra.mxu0 %v690_v43  ;;  %727 = vmatpush3.bf16.msra.mxu1 %v690_v43  ;;  %v235_v1 = vadd.f32 %v219_v60, %v135_v61  ;;  %v298_v3 = vpop.permute.xlu0 %297  ;;  %v226_v60 = vmul.f32 %v981_v6, %v970_v62 }
  0xb8   :  { %v283_v53 = vpop.permute.xlu1 %282  ;;  %v347_v4 = vadd.f32 %v298_v3, %v235_v1 }
  0xb9   :  { %v344_v54 = vadd.f32 %v283_v53, %v232_v51  ;;  %v224_v53 = vmul.f32 %v981_v6, %v965_v58 }
  0xba   :  { %v363_v10 = vmax.f32 %v347_v4, 0.0  ;;  %v308_v20 = vpop.permute.xlu0 %307 }
  0xbb   :  { %v360_v56 = vmax.f32 %v344_v54, 0.0 }
  0xbc   :  { %v87_v57 = vpop.permute.xlu1 %86 }
  0xbd   :  { %v694_v44 = vpack.c.bf16 %v361_v55, %v360_v56  ;;  %v136_v17 = vmul.f32 %v983_v7, %v87_v57 }
  0xbe   :  { %v318_v35 = vpop.permute.xlu0 %317 }
  0xbf   :  { %695 = vmatprep.subr.bf16.mxu0 %v694_v44  ;;  %720 = vmatprep.subr.bf16.mxu1 %v694_v44  ;;  %v236_v22 = vadd.f32 %v220_v16, %v136_v17 }
  0xc0   :  { %v92_v59 = vpop.permute.xlu1 %91  ;;  %697 = vmatpush3.bf16.msra.mxu0 %v694_v44  ;;  %728 = vmatpush3.bf16.msra.mxu1 %v694_v44 }
  0xc1   :  { %v137_v15 = vmul.f32 %v983_v7, %v92_v59 }
  0xc2   :  { %v328_v54 = vpop.permute.xlu0 %327 }
  0xc5   :  { %v182_v2 = vpop.permute.xlu1 %181 }
  0xc6   :  { %v221_v46 = vmul.f32 %v981_v6, %v182_v2 }
  0xc8   :  { %v237_v18 = vadd.f32 %v221_v46, %v137_v15  ;;  %v379_v46 = vld [vmem:[%s1057_s3 + $0x38] sm:$0xff]  ;;  %v391_v15 = vpop.permute.xlu0 %390 }
  0xca   :  { %v293_v8 = vpop.permute.xlu1 %292  ;;  %v349_v21 = vadd.f32 %v308_v20, %v237_v18 }
  0xcb   :  { %v346_v9 = vadd.f32 %v293_v8, %v234_v5 }
  0xcc   :  { %v365_v26 = vmax.f32 %v349_v21, 0.0  ;;  %v401_v17 = vpop.permute.xlu0 %400 }
  0xcd   :  { %v362_v11 = vmax.f32 %v346_v9, 0.0 }
  0xce   :  { %v97_v12 = vpop.permute.xlu1 %96 }
  0xcf   :  { %v698_v13 = vpack.c.bf16 %v363_v10, %v362_v11  ;;  %v138_v31 = vmul.f32 %v983_v7, %v97_v12  ;;  %v374_v12 = vld [vmem:[%s1057_s3 + $0x10] sm:$0xff] }
  0xd1   :  { %699 = vmatprep.subr.bf16.mxu0 %v698_v13  ;;  %721 = vmatprep.subr.bf16.mxu1 %v698_v13  ;;  %v238_v37 = vadd.f32 %v222_v34, %v138_v31 }
  0xd2   :  { %v102_v14 = vpop.permute.xlu1 %101  ;;  %701 = vmatpush3.bf16.msra.mxu0 %v698_v13  ;;  %729 = vmatpush3.bf16.msra.mxu1 %v698_v13  ;;  %v378_v13 = vld [vmem:[%s1057_s3 + $0x30] sm:$0xff] }
  0xd3   :  { %v139_v30 = vmul.f32 %v983_v7, %v102_v14  ;;  %v375_v14 = vld [vmem:[%s1057_s3 + $0x18] sm:$0xff] }
  0xd7   :  { %v190_v19 = vpop.permute.xlu1 %189 }
  0xd8   :  { %v223_v49 = vmul.f32 %v981_v6, %v190_v19  ;;  %v552_v19 = vpop.permute.xlu0 %551 }
  0xda   :  { %v239_v32 = vadd.f32 %v223_v49, %v139_v30 }
  0xdc   :  { %v303_v23 = vpop.permute.xlu1 %302  ;;  %v351_v36 = vadd.f32 %v318_v35, %v239_v32  ;;  %v411_v21 = vpop.permute.xlu0 %410 }
  0xdd   :  { %v348_v24 = vadd.f32 %v303_v23, %v236_v22 }
  0xde   :  { %v367_v41 = vmax.f32 %v351_v36, 0.0 }
  0xdf   :  { %v364_v25 = vmax.f32 %v348_v24, 0.0 }
  0xe0   :  { %v107_v27 = vpop.permute.xlu1 %106  ;;  %v416_v23 = vpop.permute.xlu0 %415 }
  0xe1   :  { %v702_v28 = vpack.c.bf16 %v365_v26, %v364_v25  ;;  %v140_v52 = vmul.f32 %v983_v7, %v107_v27 }
  0xe3   :  { %703 = vmatprep.subr.bf16.mxu0 %v702_v28  ;;  %722 = vmatprep.subr.bf16.mxu1 %v702_v28  ;;  %v240_v56 = vadd.f32 %v224_v53, %v140_v52 }
  0xe4   :  { %v112_v29 = vpop.permute.xlu1 %111  ;;  %705 = vmatpush3.bf16.msra.mxu0 %v702_v28  ;;  %730 = vmatpush3.bf16.msra.mxu1 %v702_v28  ;;  %v421_v30 = vpop.permute.xlu0 %420 }
  0xe5   :  { %v141_v48 = vmul.f32 %v983_v7, %v112_v29 }
  0xe8   :  { %v426_v53 = vpop.permute.xlu0 %425 }
  0xe9   :  { %v198_v33 = vpop.permute.xlu1 %197 }
  0xea   :  { %v225_v47 = vmul.f32 %v981_v6, %v198_v33 }
  0xec   :  { %v241_v50 = vadd.f32 %v225_v47, %v141_v48 }
  0xee   :  { %v313_v38 = vpop.permute.xlu1 %312  ;;  %v353_v55 = vadd.f32 %v328_v54, %v241_v50 }
  0xef   :  { %v350_v39 = vadd.f32 %v313_v38, %v238_v37 }
  0xf0   :  { %v369_v0 = vmax.f32 %v353_v55, 0.0 }
  0xf1   :  { %v366_v40 = vmax.f32 %v350_v39, 0.0 }
  0xf2   :  { %v117_v42 = vpop.permute.xlu1 %116 }
  0xf3   :  { %v706_v43 = vpack.c.bf16 %v367_v41, %v366_v40  ;;  %v142_v44 = vmul.f32 %v983_v7, %v117_v42 }
  0xf5   :  { %707 = vmatprep.subr.bf16.mxu0 %v706_v43  ;;  %723 = vmatprep.subr.bf16.mxu1 %v706_v43  ;;  %v242_v4 = vadd.f32 %v226_v60, %v142_v44 }
  0xf6   :  { %v122_v45 = vpop.permute.xlu1 %121  ;;  %709 = vmatpush3.bf16.msra.mxu0 %v706_v43  ;;  %731 = vmatpush3.bf16.msra.mxu1 %v706_v43 }
  0xf7   :  { %v143_v2 = vmul.f32 %v983_v7, %v122_v45  ;;  %v377_v7 = vld [vmem:[%s1057_s3 + $0x28] sm:$0xff] }
  0xfb   :  { %v206_v51 = vpop.permute.xlu1 %205 }
  0xfc   :  { %v227_v61 = vmul.f32 %v981_v6, %v206_v51  ;;  %v373_v6 = vld [vmem:[%s1057_s3 + $0x8] sm:$0xff] }
  0xfe   :  { %v243_v5 = vadd.f32 %v227_v61, %v143_v2  ;;  %v582_v2 = vpop.permute.xlu0 %581 }
 0x100   :  { %v323_v57 = vpop.permute.xlu1 %322 }
 0x101   :  { %v352_v59 = vadd.f32 %v323_v57, %v240_v56 }
 0x103   :  { %v368_v63 = vmax.f32 %v352_v59, 0.0 }
 0x104   :  { %v333_v1 = vpop.permute.xlu1 %332 }
 0x105   :  { %v710_v3 = vpack.c.bf16 %v369_v0, %v368_v63  ;;  %v354_v58 = vadd.f32 %v333_v1, %v242_v4 }
 0x107   :  { %711 = vmatprep.subr.bf16.mxu0 %v710_v3  ;;  %724 = vmatprep.subr.bf16.mxu1 %v710_v3  ;;  %v370_v10 = vmax.f32 %v354_v58, 0.0 }
 0x108   :  { %v338_v8 = vpop.permute.xlu1 %337  ;;  %713 = vmatpush3.bf16.msra.mxu0 %v710_v3  ;;  %732 = vmatpush3.bf16.msra.mxu1 %v710_v3 }
 0x109   :  { %v355_v9 = vadd.f32 %v338_v8, %v243_v5 }
 0x10b   :  { %v371_v11 = vmax.f32 %v355_v9, 0.0 }
 0x10c   :  { %v396_v16 = vpop.permute.xlu1 %395 }
 0x10d   :  { %v714_v62 = vpack.c.bf16 %v371_v11, %v370_v10 }
 0x10f   :  { %715 = vmatprep.subr.bf16.mxu0 %v714_v62  ;;  %725 = vmatprep.subr.bf16.mxu1 %v714_v62 }
 0x110   :  { %717 = vmatpush3.bf16.msra.mxu0 %v714_v62  ;;  %733 = vmatpush3.bf16.msra.mxu1 %v714_v62  ;;  %v406_v18 = vpop.permute.xlu1 %405 }
 0x113   :  { %675 = vmatmul.mubr.f32.vlgmr.msra.gmra.mrb[0].mxu0 %v373_v6  ;;  %681 = vmatmul.mubr.f32.vlgmr.msra.gmra.mrb[0].mxu1 %v377_v7 }
 0x114   :  { %677 = vmatprep.mubr.f32.mxu0 %v374_v12  ;;  %683 = vmatprep.mubr.f32.mxu1 %v378_v13  ;;  %v557_v20 = vpop.permute.xlu1 %556  ;;  %v611_v12 = vstv %s1059_s6 }
 0x117   :  { %678 = vmatmul.mubr.f32.gmra.mrb[2].mxu0 %v375_v14  ;;  %684 = vmatmul.mubr.f32.gmra.mrb[2].mxu1 %v379_v46 }
 0x118   :  { %v562_v22 = vpop.permute.xlu1 %561 }
 0x11c   :  { %v567_v24 = vpop.permute.xlu1 %566 }
 0x120   :  { %v572_v42 = vpop.permute.xlu1 %571 }
 0x124   :  { %v577_v44 = vpop.permute.xlu1 %576 }
 0x128   :  { %v587_v58 = vpop.permute.xlu1 %586 }
 0x1e6   :  { %v676_v25 = vpop.f32.mrb[0].mxu0  ;;  %v682_v26 = vpop.f32.mrb[0].mxu1 }
 0x1e7   :  { %v500_v27 = vadd.f32 %v676_v25, %v396_v16  ;;  %v494_v28 = vpop.f32.mrb[1].mxu0  ;;  %v514_v29 = vpop.f32.mrb[1].mxu1  ;;  %v520_v43 = vadd.f32 %v682_v26, %v416_v23 }
 0x1e8   :  { %v495_v49 = vadd.f32 %v494_v28, %v391_v15  ;;  %v515_v40 = vadd.f32 %v514_v29, %v411_v21 }
 0x1e9   :  { %v534_v31 = vmax.f32 %v500_v27, 0.0  ;;  %v538_v54 = vmax.f32 %v520_v43, 0.0 }
 0x1ea   :  { %v533_v32 = vmax.f32 %v495_v49, 0.0  ;;  %v679_v33 = vpop.f32.mrb[2].mxu0  ;;  %v685_v34 = vpop.f32.mrb[2].mxu1  ;;  %v537_v52 = vmax.f32 %v515_v40, 0.0 }
 0x1eb   :  { %v590_v35 = vmul.f32 %v557_v20, %v534_v31  ;;  %v510_v36 = vadd.f32 %v679_v33, %v406_v18  ;;  %v504_v37 = vpop.f32.mrb[3].mxu0  ;;  %v524_v38 = vpop.f32.mrb[3].mxu1  ;;  %v530_v56 = vadd.f32 %v685_v34, %v426_v53  ;;  %v594_v63 = vmul.f32 %v577_v44, %v538_v54 }
 0x1ec   :  { %v589_v39 = vmul.f32 %v552_v19, %v533_v32  ;;  %v505_v41 = vadd.f32 %v504_v37, %v401_v17  ;;  %v525_v51 = vadd.f32 %v524_v38, %v421_v30  ;;  %v593_v59 = vmul.f32 %v572_v42, %v537_v52 }
 0x1ed   :  { %v536_v47 = vmax.f32 %v510_v36, 0.0  ;;  %v540_v0 = vmax.f32 %v530_v56, 0.0 }
 0x1ee   :  { %v597_v45 = vadd.f32 %v590_v35, %v589_v39  ;;  %v535_v48 = vmax.f32 %v505_v41, 0.0  ;;  %v539_v61 = vmax.f32 %v525_v51, 0.0 }
 0x1ef   :  { %v592_v55 = vmul.f32 %v567_v24, %v536_v47  ;;  %v596_v5 = vmul.f32 %v587_v58, %v540_v0 }
 0x1f0   :  { %v591_v50 = vmul.f32 %v562_v22, %v535_v48  ;;  %v595_v3 = vmul.f32 %v582_v2, %v539_v61 }
 0x1f2   :  { %v598_v57 = vadd.f32 %v597_v45, %v591_v50 }
 0x1f4   :  { %v599_v60 = vadd.f32 %v598_v57, %v592_v55 }
 0x1f6   :  { %v600_v1 = vadd.f32 %v599_v60, %v593_v59 }
 0x1f8   :  { %v601_v4 = vadd.f32 %v600_v1, %v594_v63 }
 0x1fa   :  { %v602_v8 = vadd.f32 %v601_v4, %v595_v3 }
 0x1fc   :  { %v603_v9 = vadd.f32 %v602_v8, %v596_v5 }
 0x1fe   :  { %v604_v10 = vrot.slane %v603_v9, 4 }
 0x200   :  { %v605_v11 = vadd.f32 %v604_v10, %v603_v9 }
 0x202   :  { %v606_v62 = vrot.slane %v605_v11, 2 }
 0x204   :  { %v607_v6 = vadd.f32 %v606_v62, %v605_v11 }
 0x206   :  { %v608_v7 = vrot.slane %v607_v6, 1 }
 0x208   :  { %v609_v13 = vadd.f32 %v608_v7, %v607_v6 }
 0x20a   :  { %v612_v14 = vadd.f32 %v611_v12, %v609_v13 }
 0x20c   :  { %613 = vst [vmem:[%s1060_s7] sm:$0x1] %v612_v14 }

</bundles_post_ra>
